<compile_context>
chip_gen: v7x
topology: tpu7x:2x2x1
jax: 0.10.0
libtpu: 0.0.40
codegen_flags: <defaults>
</compile_context>

<pallas_src>
import functools

import jax
import jax.numpy as jnp
from jax import lax
from jax.experimental import pallas as pl
from jax.experimental.pallas import tpu as pltpu


def _wab_fused_kernel(x_body_ref, x_top_ref, x_bot_ref,
                      w1_ref, b1_ref, w2_ref, b2_ref, w3_ref, b3_ref,
                      o_ref, *, W, C, TH, mm_dtype):
    """One (batch, row-tile) grid step.

    x_body_ref : (1, TH, W, C)   rows [i*TH, (i+1)*TH) of this batch
    x_top_ref  : (1, 1,  W, C)   row i*TH - 1 (clamped to 0 at the top edge)
    x_bot_ref  : (1, 1,  W, C)   row (i+1)*TH (clamped to H-1 at the bottom edge)
    o_ref      : (1, TH, W, C)
    """
    i = pl.program_id(1)
    n_tiles = pl.num_programs(1)

    x_body = x_body_ref[0]                                            # (TH, W, C)
    window = jnp.concatenate([x_top_ref[0], x_body, x_bot_ref[0]], axis=0)
    window = window.reshape((TH + 2) * W, C)                          # rows r0-1 .. r0+TH

    # ---- 1x1 expand -> ReLU -> 1x1 project (f32 accumulation on the MXU) ----
    h1 = jnp.dot(window.astype(mm_dtype), w1_ref[...],
                 preferred_element_type=jnp.float32)
    h1 = jnp.maximum(h1 + b1_ref[...], 0.0)
    h2 = jnp.dot(h1.astype(mm_dtype), w2_ref[...],
                 preferred_element_type=jnp.float32) + b2_ref[...]
    h2 = h2.reshape(TH + 2, W, C)

    # conv3's zero padding acts on h2: zero the halo rows that fall outside the image
    # (also kills the garbage from the edge-clamped halo loads).  Tiny (TH+2,1,1)
    # predicate + one broadcast multiply instead of a tile-sized iota/compare/select.
    r = lax.broadcasted_iota(jnp.int32, (TH + 2, 1, 1), 0)
    keep = jnp.logical_and(jnp.logical_or(r >= 1, i > 0),
                           jnp.logical_or(r <= TH, i < n_tiles - 1))
    h2 = h2 * keep.astype(h2.dtype)

    # Zero-pad the column dim so every 3x3 tap below is a static slice.
    zcol = jnp.zeros((TH + 2, 1, C), h2.dtype)
    canvas = jnp.concatenate([zcol, h2, zcol], axis=1)                # (TH+2, W+2, C)

    # ---- 3x3 conv: three (TH*W, 3C) @ (3C, C) MXU contractions + bias + residual ----
    acc = x_body.reshape(TH * W, C).astype(jnp.float32) + b3_ref[...]
    for ky in range(3):                                               # static, unrolled
        slab = jnp.concatenate(
            [canvas[ky:ky + TH, kx:kx + W, :] for kx in range(3)], axis=-1)
        acc = acc + jnp.dot(slab.reshape(TH * W, 3 * C).astype(mm_dtype),
                            w3_ref[ky], preferred_element_type=jnp.float32)

    o_ref[0] = acc.reshape(TH, W, C).astype(o_ref.dtype)


def _vmem_capacity_bytes():
    try:
        cap = getattr(pltpu.get_tpu_info(), "vmem_capacity_bytes", None)
        if cap:
            return int(cap)
    except Exception:
        pass
    return 64 * 1024 * 1024   # conservative fallback (v7x per-core VMEM)


def _default_tile_rows(H, W, C, M, budget_bytes):
    """Largest row-tile TH dividing H whose per-step working set fits budget_bytes."""
    f32 = 4
    for th in range(H, 0, -1):
        if H % th:
            continue
        rows = (th + 2) * W
        interm = (rows * (2 * C + M)              # x window + h1 (6C wide) + h2
                  + (th + 2) * (W + 2) * C        # column-padded canvas
                  + 2 * 3 * th * W * C            # per-ky tap slab + concat staging
                  + th * W * C)                   # f32 accumulator
        io = 2 * (2 * th * W * C + 2 * W * C)     # double-buffered body/out + halo blocks
        wts = 2 * (2 * C * M + 9 * C * C + M + 2 * C)   # double-buffered weights/biases
        if f32 * (interm + io + wts) <= budget_bytes:
            return th
    return 1
    # TODO(synk): chunk the expand/project over row sub-chunks (fori_loop into a VMEM
    # scratch canvas) so the 6C-wide h1 never lives in full; lets TH grow further on v7x.


def wide_activation_block(x_nhwc, params, *, tile_rows=None,
                          matmul_dtype=jnp.float32, vmem_limit_bytes=None):
    B, H, W, C = x_nhwc.shape
    w1, b1 = params["w1"], params["b1"]
    w2, b2 = params["w2"], params["b2"]
    w3, b3 = params["w3"], params["b3"]
    M = w1.shape[1]

    vmem_cap = _vmem_capacity_bytes()
    if tile_rows is None:
        tile_rows = _default_tile_rows(H, W, C, M, budget_bytes=int(0.70 * vmem_cap))
    TH = tile_rows
    assert H % TH == 0, "tile_rows must divide H"
    T = H // TH
    if vmem_limit_bytes is None:
        # Always set explicitly: v5e's default scoped limit (16 MiB) would reject the
        # intended tile; ~54 MiB on v7x (64 MiB physical), ~108 MiB on v5e/v6e.
        vmem_limit_bytes = int(0.85 * vmem_cap)

    # One-off weight prep (outside the kernel).
    w3k = w3.reshape(3, 3 * C, C)                 # row (kx*C + cin) matches slab layout
    w1c = w1.astype(matmul_dtype)
    w2c = w2.astype(matmul_dtype)
    w3c = w3k.astype(matmul_dtype)
    b1r = b1.reshape(1, M).astype(jnp.float32)
    b2r = b2.reshape(1, C).astype(jnp.float32)
    b3r = b3.reshape(1, C).astype(jnp.float32)

    kernel = functools.partial(_wab_fused_kernel, W=W, C=C, TH=TH,
                               mm_dtype=matmul_dtype)

    def const_spec(shape):
        return pl.BlockSpec(shape, lambda b, i, _z=(0,) * len(shape): _z)

    body_spec = pl.BlockSpec((1, TH, W, C), lambda b, i: (b, i, 0, 0))
    top_spec = pl.BlockSpec((1, 1, W, C),
                            lambda b, i: (b, jnp.maximum(i * TH - 1, 0), 0, 0))
    bot_spec = pl.BlockSpec((1, 1, W, C),
                            lambda b, i: (b, jnp.minimum((i + 1) * TH, H - 1), 0, 0))

    flops = 2 * B * H * W * (2 * C * M + 9 * C * C)
    bytes_accessed = 4 * (B * H * W * C + B * T * 2 * W * C + B * H * W * C
                          + 2 * C * M + 9 * C * C + M + 2 * C)

    out = pl.pallas_call(
        kernel,
        out_shape=jax.ShapeDtypeStruct((B, H, W, C), x_nhwc.dtype),
        grid=(B, T),
        in_specs=[
            body_spec, top_spec, bot_spec,
            const_spec((C, M)), const_spec((1, M)),
            const_spec((M, C)), const_spec((1, C)),
            const_spec((3, 3 * C, C)), const_spec((1, C)),
        ],
        out_specs=pl.BlockSpec((1, TH, W, C), lambda b, i: (b, i, 0, 0)),
        compiler_params=pltpu.CompilerParams(
            dimension_semantics=("parallel", "parallel"),
            vmem_limit_bytes=vmem_limit_bytes),
        cost_estimate=pl.CostEstimate(flops=flops, transcendentals=0,
                                      bytes_accessed=bytes_accessed),
    )(x_nhwc, x_nhwc, x_nhwc, w1c, b1r, w2c, b2r, w3c, b3r)
    return out


def reference(x_nhwc, params):
    # Pure-JAX reference (same NHWC semantics as the PyTorch module).
    dn = ("NHWC", "HWIO", "NHWC")
    C, M = params["w1"].shape
    h = lax.conv_general_dilated(
        x_nhwc, params["w1"].reshape(1, 1, C, M), (1, 1), "VALID",
        dimension_numbers=dn) + params["b1"]
    h = jnp.maximum(h, 0.0)
    h = lax.conv_general_dilated(
        h, params["w2"].reshape(1, 1, M, C), (1, 1), "VALID",
        dimension_numbers=dn) + params["b2"]
    h = lax.conv_general_dilated(
        h, params["w3"], (1, 1), "SAME", dimension_numbers=dn) + params["b3"]
    return x_nhwc + h


if __name__ == "__main__":
    B, C, H, W = 2, 4, 16, 16
    expansion = 6
    M = C * expansion

    key = jax.random.PRNGKey(0)
    ks = jax.random.split(key, 7)
    params = {
        "w1": jax.random.normal(ks[0], (C, M), jnp.float32) * 0.1,        # conv1 1x1
        "b1": jax.random.normal(ks[1], (M,), jnp.float32) * 0.1,
        "w2": jax.random.normal(ks[2], (M, C), jnp.float32) * 0.1,        # conv2 1x1
        "b2": jax.random.normal(ks[3], (C,), jnp.float32) * 0.1,
        "w3": jax.random.normal(ks[4], (3, 3, C, C), jnp.float32) * 0.1,  # conv3 3x3 HWIO
        "b3": jax.random.normal(ks[5], (C,), jnp.float32) * 0.1,
    }

    # PyTorch-style NCHW input, transposed to the kernel's NHWC layout.
    x_nchw = jax.random.normal(ks[6], (B, C, H, W), jnp.float32)
    x_nhwc = jnp.transpose(x_nchw, (0, 2, 3, 1))

    # tile_rows=8 exercises the multi-tile halo/clamp path (grid = (2, 2)).
    out = jax.block_until_ready(wide_activation_block(x_nhwc, params, tile_rows=8))
    ref = reference(x_nhwc, params)

    assert out.shape == (B, H, W, C)
    assert jnp.allclose(out, ref, atol=1e-4, rtol=1e-4), "mismatch vs reference"
    print("KERNEL_OK")
</pallas_src>

<mosaic_0001>
module attributes {stable_mosaic.version = 11 : i64} {
  func.func @_wab_fused_kernel(%arg0: i32, %arg1: i32, %arg2: memref<1x8x16x4xf32, #tpu.memory_space<vmem>>, %arg3: memref<1x1x16x4xf32, #tpu.memory_space<vmem>>, %arg4: memref<1x1x16x4xf32, #tpu.memory_space<vmem>>, %arg5: memref<4x24xf32, #tpu.memory_space<vmem>>, %arg6: memref<1x24xf32, #tpu.memory_space<vmem>>, %arg7: memref<24x4xf32, #tpu.memory_space<vmem>>, %arg8: memref<1x4xf32, #tpu.memory_space<vmem>>, %arg9: memref<3x12x4xf32, #tpu.memory_space<vmem>>, %arg10: memref<1x4xf32, #tpu.memory_space<vmem>>, %arg11: memref<1x8x16x4xf32, #tpu.memory_space<vmem>>) attributes {dimension_semantics = [#tpu.dimension_semantics<parallel>, #tpu.dimension_semantics<parallel>], iteration_bounds = array<i64: 2, 2>, scalar_prefetch = 0 : i64, scratch_operands = 0 : i64, tpu.core_type = #tpu.core_type<tc>, window_params = [{transform_indices = @transform_0, window_bounds = array<i64: 1, 8, 16, 4>}, {transform_indices = @transform_1, window_bounds = array<i64: 1, 1, 16, 4>}, {transform_indices = @transform_2, window_bounds = array<i64: 1, 1, 16, 4>}, {pipeline_mode = #tpu.pipeline_mode<synchronous>, transform_indices = @transform_3, window_bounds = array<i64: 4, 24>}, {pipeline_mode = #tpu.pipeline_mode<synchronous>, transform_indices = @transform_4, window_bounds = array<i64: 1, 24>}, {pipeline_mode = #tpu.pipeline_mode<synchronous>, transform_indices = @transform_5, window_bounds = array<i64: 24, 4>}, {pipeline_mode = #tpu.pipeline_mode<synchronous>, transform_indices = @transform_6, window_bounds = array<i64: 1, 4>}, {pipeline_mode = #tpu.pipeline_mode<synchronous>, transform_indices = @transform_7, window_bounds = array<i64: 3, 12, 4>}, {pipeline_mode = #tpu.pipeline_mode<synchronous>, transform_indices = @transform_8, window_bounds = array<i64: 1, 4>}, {transform_indices = @transform_9, window_bounds = array<i64: 1, 8, 16, 4>}]} {
    %c0 = arith.constant 0 : index
    %c0_0 = arith.constant 0 : index
    %c0_1 = arith.constant 0 : index
    %c0_2 = arith.constant 0 : index
    %0 = vector.load %arg2[%c0, %c0_0, %c0_1, %c0_2] : memref<1x8x16x4xf32, #tpu.memory_space<vmem>>, vector<1x8x16x4xf32>
    %1 = vector.shape_cast %0 : vector<1x8x16x4xf32> to vector<8x16x4xf32>
    %c0_3 = arith.constant 0 : index
    %c0_4 = arith.constant 0 : index
    %c0_5 = arith.constant 0 : index
    %c0_6 = arith.constant 0 : index
    %2 = vector.load %arg3[%c0_3, %c0_4, %c0_5, %c0_6] : memref<1x1x16x4xf32, #tpu.memory_space<vmem>>, vector<1x1x16x4xf32>
    %3 = vector.shape_cast %2 : vector<1x1x16x4xf32> to vector<1x16x4xf32>
    %c0_7 = arith.constant 0 : index
    %c0_8 = arith.constant 0 : index
    %c0_9 = arith.constant 0 : index
    %c0_10 = arith.constant 0 : index
    %4 = vector.load %arg4[%c0_7, %c0_8, %c0_9, %c0_10] : memref<1x1x16x4xf32, #tpu.memory_space<vmem>>, vector<1x1x16x4xf32>
    %5 = vector.shape_cast %4 : vector<1x1x16x4xf32> to vector<1x16x4xf32>
    %6 = tpu.concatenate %3, %1, %5 in 0 : vector<1x16x4xf32>, vector<8x16x4xf32>, vector<1x16x4xf32> -> vector<10x16x4xf32>
    %7 = vector.shape_cast %6 : vector<10x16x4xf32> to vector<160x4xf32>
    %c0_11 = arith.constant 0 : index
    %c0_12 = arith.constant 0 : index
    %8 = vector.load %arg5[%c0_11, %c0_12] : memref<4x24xf32, #tpu.memory_space<vmem>>, vector<4x24xf32>
    %cst = arith.constant dense<0.000000e+00> : vector<160x24xf32>
    %9 = tpu.matmul %7, %8, %cst {dimension_numbers = #tpu.dot_dimension_numbers<[1], [0], [0], [1], [0, 0, 1, 1], [], []>} : vector<160x4xf32>, vector<4x24xf32>, vector<160x24xf32> -> vector<160x24xf32>
    %c0_13 = arith.constant 0 : index
    %c0_14 = arith.constant 0 : index
    %10 = vector.load %arg6[%c0_13, %c0_14] : memref<1x24xf32, #tpu.memory_space<vmem>>, vector<1x24xf32>
    %11 = vector.broadcast %10 : vector<1x24xf32> to vector<160x24xf32>
    %12 = arith.addf %9, %11 : vector<160x24xf32>
    %cst_15 = arith.constant 0.000000e+00 : f32
    %13 = vector.broadcast %cst_15 : f32 to vector<160x24xf32>
    %14 = arith.maximumf %12, %13 : vector<160x24xf32>
    %c0_16 = arith.constant 0 : index
    %c0_17 = arith.constant 0 : index
    %15 = vector.load %arg7[%c0_16, %c0_17] : memref<24x4xf32, #tpu.memory_space<vmem>>, vector<24x4xf32>
    %cst_18 = arith.constant dense<0.000000e+00> : vector<160x4xf32>
    %16 = tpu.matmul %14, %15, %cst_18 {dimension_numbers = #tpu.dot_dimension_numbers<[1], [0], [0], [1], [0, 0, 1, 1], [], []>} : vector<160x24xf32>, vector<24x4xf32>, vector<160x4xf32> -> vector<160x4xf32>
    %c0_19 = arith.constant 0 : index
    %c0_20 = arith.constant 0 : index
    %17 = vector.load %arg8[%c0_19, %c0_20] : memref<1x4xf32, #tpu.memory_space<vmem>>, vector<1x4xf32>
    %18 = vector.broadcast %17 : vector<1x4xf32> to vector<160x4xf32>
    %19 = arith.addf %16, %18 : vector<160x4xf32>
    %20 = vector.shape_cast %19 : vector<160x4xf32> to vector<10x16x4xf32>
    %21 = tpu.iota {dimensions = array<i32: 0>} : vector<10x1x1xi32>
    %c1_i32 = arith.constant 1 : i32
    %22 = vector.broadcast %c1_i32 : i32 to vector<10x1x1xi32>
    %23 = arith.cmpi sge, %21, %22 : vector<10x1x1xi32>
    %c0_i32 = arith.constant 0 : i32
    %24 = arith.cmpi sgt, %arg1, %c0_i32 : i32
    %25 = vector.broadcast %24 : i1 to vector<10x1x1xi1>
    %26 = arith.ori %23, %25 : vector<10x1x1xi1>
    %c8_i32 = arith.constant 8 : i32
    %27 = vector.broadcast %c8_i32 : i32 to vector<10x1x1xi32>
    %28 = arith.cmpi sle, %21, %27 : vector<10x1x1xi32>
    %c1_i32_21 = arith.constant 1 : i32
    %29 = arith.cmpi slt, %arg1, %c1_i32_21 : i32
    %30 = vector.broadcast %29 : i1 to vector<10x1x1xi1>
    %31 = arith.ori %28, %30 : vector<10x1x1xi1>
    %32 = arith.andi %26, %31 : vector<10x1x1xi1>
    %33 = arith.extui %32 : vector<10x1x1xi1> to vector<10x1x1xi32>
    %34 = arith.sitofp %33 : vector<10x1x1xi32> to vector<10x1x1xf32>
    %35 = vector.broadcast %34 : vector<10x1x1xf32> to vector<10x16x4xf32>
    %36 = arith.mulf %20, %35 : vector<10x16x4xf32>
    %cst_22 = arith.constant 0.000000e+00 : f32
    %37 = vector.broadcast %cst_22 : f32 to vector<10x1x4xf32>
    %38 = tpu.concatenate %37, %36, %37 in 1 : vector<10x1x4xf32>, vector<10x16x4xf32>, vector<10x1x4xf32> -> vector<10x18x4xf32>
    %39 = vector.shape_cast %1 : vector<8x16x4xf32> to vector<128x4xf32>
    %c0_23 = arith.constant 0 : index
    %c0_24 = arith.constant 0 : index
    %40 = vector.load %arg10[%c0_23, %c0_24] : memref<1x4xf32, #tpu.memory_space<vmem>>, vector<1x4xf32>
    %41 = vector.broadcast %40 : vector<1x4xf32> to vector<128x4xf32>
    %42 = arith.addf %39, %41 : vector<128x4xf32>
    %43 = vector.extract_strided_slice %38 {offsets = [0, 0, 0], sizes = [8, 16, 4], strides = [1, 1, 1]} : vector<10x18x4xf32> to vector<8x16x4xf32>
    %44 = vector.extract_strided_slice %38 {offsets = [0, 1, 0], sizes = [8, 16, 4], strides = [1, 1, 1]} : vector<10x18x4xf32> to vector<8x16x4xf32>
    %45 = vector.extract_strided_slice %38 {offsets = [0, 2, 0], sizes = [8, 16, 4], strides = [1, 1, 1]} : vector<10x18x4xf32> to vector<8x16x4xf32>
    %46 = tpu.concatenate %43, %44, %45 in 2 : vector<8x16x4xf32>, vector<8x16x4xf32>, vector<8x16x4xf32> -> vector<8x16x12xf32>
    %47 = vector.shape_cast %46 : vector<8x16x12xf32> to vector<128x12xf32>
    %c0_25 = arith.constant 0 : index
    %c0_26 = arith.constant 0 : index
    %c0_27 = arith.constant 0 : index
    %48 = vector.load %arg9[%c0_25, %c0_26, %c0_27] : memref<3x12x4xf32, #tpu.memory_space<vmem>>, vector<1x12x4xf32>
    %49 = vector.shape_cast %48 : vector<1x12x4xf32> to vector<12x4xf32>
    %cst_28 = arith.constant dense<0.000000e+00> : vector<128x4xf32>
    %50 = tpu.matmul %47, %49, %cst_28 {dimension_numbers = #tpu.dot_dimension_numbers<[1], [0], [0], [1], [0, 0, 1, 1], [], []>} : vector<128x12xf32>, vector<12x4xf32>, vector<128x4xf32> -> vector<128x4xf32>
    %51 = arith.addf %42, %50 : vector<128x4xf32>
    %52 = vector.extract_strided_slice %38 {offsets = [1, 0, 0], sizes = [8, 16, 4], strides = [1, 1, 1]} : vector<10x18x4xf32> to vector<8x16x4xf32>
    %53 = vector.extract_strided_slice %38 {offsets = [1, 1, 0], sizes = [8, 16, 4], strides = [1, 1, 1]} : vector<10x18x4xf32> to vector<8x16x4xf32>
    %54 = vector.extract_strided_slice %38 {offsets = [1, 2, 0], sizes = [8, 16, 4], strides = [1, 1, 1]} : vector<10x18x4xf32> to vector<8x16x4xf32>
    %55 = tpu.concatenate %52, %53, %54 in 2 : vector<8x16x4xf32>, vector<8x16x4xf32>, vector<8x16x4xf32> -> vector<8x16x12xf32>
    %56 = vector.shape_cast %55 : vector<8x16x12xf32> to vector<128x12xf32>
    %c1 = arith.constant 1 : index
    %c0_29 = arith.constant 0 : index
    %c0_30 = arith.constant 0 : index
    %57 = vector.load %arg9[%c1, %c0_29, %c0_30] : memref<3x12x4xf32, #tpu.memory_space<vmem>>, vector<1x12x4xf32>
    %58 = vector.shape_cast %57 : vector<1x12x4xf32> to vector<12x4xf32>
    %cst_31 = arith.constant dense<0.000000e+00> : vector<128x4xf32>
    %59 = tpu.matmul %56, %58, %cst_31 {dimension_numbers = #tpu.dot_dimension_numbers<[1], [0], [0], [1], [0, 0, 1, 1], [], []>} : vector<128x12xf32>, vector<12x4xf32>, vector<128x4xf32> -> vector<128x4xf32>
    %60 = arith.addf %51, %59 : vector<128x4xf32>
    %61 = vector.extract_strided_slice %38 {offsets = [2, 0, 0], sizes = [8, 16, 4], strides = [1, 1, 1]} : vector<10x18x4xf32> to vector<8x16x4xf32>
    %62 = vector.extract_strided_slice %38 {offsets = [2, 1, 0], sizes = [8, 16, 4], strides = [1, 1, 1]} : vector<10x18x4xf32> to vector<8x16x4xf32>
    %63 = vector.extract_strided_slice %38 {offsets = [2, 2, 0], sizes = [8, 16, 4], strides = [1, 1, 1]} : vector<10x18x4xf32> to vector<8x16x4xf32>
    %64 = tpu.concatenate %61, %62, %63 in 2 : vector<8x16x4xf32>, vector<8x16x4xf32>, vector<8x16x4xf32> -> vector<8x16x12xf32>
    %65 = vector.shape_cast %64 : vector<8x16x12xf32> to vector<128x12xf32>
    %c2 = arith.constant 2 : index
    %c0_32 = arith.constant 0 : index
    %c0_33 = arith.constant 0 : index
    %66 = vector.load %arg9[%c2, %c0_32, %c0_33] : memref<3x12x4xf32, #tpu.memory_space<vmem>>, vector<1x12x4xf32>
    %67 = vector.shape_cast %66 : vector<1x12x4xf32> to vector<12x4xf32>
    %cst_34 = arith.constant dense<0.000000e+00> : vector<128x4xf32>
    %68 = tpu.matmul %65, %67, %cst_34 {dimension_numbers = #tpu.dot_dimension_numbers<[1], [0], [0], [1], [0, 0, 1, 1], [], []>} : vector<128x12xf32>, vector<12x4xf32>, vector<128x4xf32> -> vector<128x4xf32>
    %69 = arith.addf %60, %68 : vector<128x4xf32>
    %70 = vector.shape_cast %69 : vector<128x4xf32> to vector<8x16x4xf32>
    %c0_35 = arith.constant 0 : index
    %c0_36 = arith.constant 0 : index
    %c0_37 = arith.constant 0 : index
    %c0_38 = arith.constant 0 : index
    %71 = vector.load %arg11[%c0_35, %c0_36, %c0_37, %c0_38] : memref<1x8x16x4xf32, #tpu.memory_space<vmem>>, vector<1x8x16x4xf32>
    %72 = vector.shape_cast %71 : vector<1x8x16x4xf32> to vector<8x16x4xf32>
    %73 = vector.shape_cast %70 : vector<8x16x4xf32> to vector<1x8x16x4xf32>
    tpu.vector_store %arg11[%c0_35, %c0_36, %c0_37, %c0_38], %73 {strides = array<i32>} : memref<1x8x16x4xf32, #tpu.memory_space<vmem>>, vector<1x8x16x4xf32>,
    return
  }
  func.func @transform_0(%arg0: i32, %arg1: i32) -> (i32, i32, i32, i32) {
    %c0_i32 = arith.constant 0 : i32
    %c0_i32_0 = arith.constant 0 : i32
    %c0_i32_1 = arith.constant 0 : i32
    return %arg0, %arg1, %c0_i32, %c0_i32_0 : i32, i32, i32, i32
  }
  func.func @transform_1(%arg0: i32, %arg1: i32) -> (i32, i32, i32, i32) {
    %c8_i32 = arith.constant 8 : i32
    %0 = arith.muli %arg1, %c8_i32 : i32
    %c1_i32 = arith.constant 1 : i32
    %1 = arith.subi %0, %c1_i32 : i32
    %c0_i32 = arith.constant 0 : i32
    %2 = arith.maxsi %1, %c0_i32 : i32
    %c0_i32_0 = arith.constant 0 : i32
    %c0_i32_1 = arith.constant 0 : i32
    %c0_i32_2 = arith.constant 0 : i32
    return %arg0, %2, %c0_i32_0, %c0_i32_1 : i32, i32, i32, i32
  }
  func.func @transform_2(%arg0: i32, %arg1: i32) -> (i32, i32, i32, i32) {
    %c1_i32 = arith.constant 1 : i32
    %0 = arith.addi %arg1, %c1_i32 : i32
    %c8_i32 = arith.constant 8 : i32
    %1 = arith.muli %0, %c8_i32 : i32
    %c15_i32 = arith.constant 15 : i32
    %2 = arith.minsi %1, %c15_i32 : i32
    %c0_i32 = arith.constant 0 : i32
    %c0_i32_0 = arith.constant 0 : i32
    %c0_i32_1 = arith.constant 0 : i32
    return %arg0, %2, %c0_i32, %c0_i32_0 : i32, i32, i32, i32
  }
  func.func @transform_3(%arg0: i32, %arg1: i32) -> (i32, i32) {
    %c0_i32 = arith.constant 0 : i32
    %c0_i32_0 = arith.constant 0 : i32
    %c0_i32_1 = arith.constant 0 : i32
    return %c0_i32, %c0_i32_0 : i32, i32
  }
  func.func @transform_4(%arg0: i32, %arg1: i32) -> (i32, i32) {
    %c0_i32 = arith.constant 0 : i32
    %c0_i32_0 = arith.constant 0 : i32
    %c0_i32_1 = arith.constant 0 : i32
    return %c0_i32, %c0_i32_0 : i32, i32
  }
  func.func @transform_5(%arg0: i32, %arg1: i32) -> (i32, i32) {
    %c0_i32 = arith.constant 0 : i32
    %c0_i32_0 = arith.constant 0 : i32
    %c0_i32_1 = arith.constant 0 : i32
    return %c0_i32, %c0_i32_0 : i32, i32
  }
  func.func @transform_6(%arg0: i32, %arg1: i32) -> (i32, i32) {
    %c0_i32 = arith.constant 0 : i32
    %c0_i32_0 = arith.constant 0 : i32
    %c0_i32_1 = arith.constant 0 : i32
    return %c0_i32, %c0_i32_0 : i32, i32
  }
  func.func @transform_7(%arg0: i32, %arg1: i32) -> (i32, i32, i32) {
    %c0_i32 = arith.constant 0 : i32
    %c0_i32_0 = arith.constant 0 : i32
    %c0_i32_1 = arith.constant 0 : i32
    %c0_i32_2 = arith.constant 0 : i32
    return %c0_i32, %c0_i32_0, %c0_i32_1 : i32, i32, i32
  }
  func.func @transform_8(%arg0: i32, %arg1: i32) -> (i32, i32) {
    %c0_i32 = arith.constant 0 : i32
    %c0_i32_0 = arith.constant 0 : i32
    %c0_i32_1 = arith.constant 0 : i32
    return %c0_i32, %c0_i32_0 : i32, i32
  }
  func.func @transform_9(%arg0: i32, %arg1: i32) -> (i32, i32, i32, i32) {
    %c0_i32 = arith.constant 0 : i32
    %c0_i32_0 = arith.constant 0 : i32
    %c0_i32_1 = arith.constant 0 : i32
    return %arg0, %arg1, %c0_i32, %c0_i32_0 : i32, i32, i32, i32
  }
}

</mosaic_0001>

<bundles_post_ra>
// kernel: tpu_custom_call.1
= control target key start
LH: loop header
LB: loop body
LE: loop exit
PB: predicated region body
PF: predicated region fallthrough
CT: control target
= control target key end

     0   :  { %s2796_s30 = smov 0   ;;  %s2798_s10 = smov 0   ;;  %s3521_s0 = inlined_call_operand.vmem [shape: f32[2,16,16,4], index: 0, kind: input, shape index: {}]   ;;  %s3522_s1 = inlined_call_operand.vmem [shape: f32[2,16,16,4], index: 1, kind: input, shape index: {}]   ;;  %s3523_s2 = inlined_call_operand.vmem [shape: f32[2,16,16,4], index: 2, kind: input, shape index: {}]   ;;  %s3524_s3 = inlined_call_operand.vmem [shape: f32[4,24], index: 3, kind: input, shape index: {}]   ;;  %s3525_s4 = inlined_call_operand.vmem [shape: f32[1,24], index: 4, kind: input, shape index: {}]   ;;  %s3526_s5 = inlined_call_operand.vmem [shape: f32[24,4], index: 5, kind: input, shape index: {}]   ;;  %s3527_s6 = inlined_call_operand.vmem [shape: f32[1,4], index: 6, kind: input, shape index: {}]   ;;  %s3528_s7 = inlined_call_operand.vmem [shape: f32[3,12,4], index: 7, kind: input, shape index: {}]   ;;  %s3529_s8 = inlined_call_operand.vmem [shape: f32[1,4], index: 8, kind: input, shape index: {}]   ;;  %s3530_s9 = inlined_call_operand.vmem [shape: f32[2,16,16,4], index: 9, kind: output, shape index: {}]  }
   0x1   :  { %s2800_s11 = smov 0   ;;  %s2802_s12 = smov 0  }
   0x2   :  { %s2804_s13 = smov 0  }
   0x3 LB: > { %s28_s14 = sadd.s32 1, %s2732_s11  ;;  %s31_s15 = sadd.s32 1, %s2736_s12  ;;  %s2740_s13 = sphi %s2804_s13, %s19_s13   ;;  %s2736_s12 = sphi %s2802_s12, %s3537_s12   ;;  %s2732_s11 = sphi %s2800_s11, %s3536_s11   ;;  %s2728_s10 = sphi %s2798_s10, %s3535_s10   ;;  %s2724_s30 = sphi %s2796_s30, %s3534_s30  }
   0x4   : > { %p29_p0 = scmp.ge.s32.totalorder %s28_s14, 2  ;;  %p2183_p1 = scmp.ge.s32.totalorder %s2740_s13, 1 }
   0x5   : > { %p373_p2 = scmp.lt.s32.totalorder %s2740_s13, 5 }
   0x6   : > { %s3539_s14 = smov (%p29_p0, %s28_s14), 0  ;;  %s3541_s15 = smov (!%p29_p0, %s31_s15), %s2736_s12 }
   0x7   : > { %p374_p3 = pnand %p2183_p1, %p373_p2  ;;  %p33_p4 = scmp.ge.s32.totalorder %s3541_s15, 2 }
   0x8   : > { %v521_v0 = vld [vmem:[%s3524_s3] sm:$0xf] (!%p374_p3)  ;;  %vm590_vm0 = vcmask (!%p374_p3), 1043456   ;;  %s2832_s18 = sshll.u32 (!%p374_p3), %s2724_s30, 3  ;;  %p446_p5 = scmp.lt.s32.totalorder (!%p374_p3), %s2728_s10, 1  ;;  %v780_v2 = vld [vmem:[%s3526_s5 + $0x8] sm:$0xff] (!%p374_p3) }
   0x9   : > { %s3543_s15 = smov (%p33_p4, %s3541_s15), 0  ;;  %377 = sbr.rel (%p374_p3) target bundleno = 907 (0x38b), region = 56 }
   0xa   : > { %2418 = vmatprep.subr.msk.mxu1 (!%p374_p3), %vm590_vm0, %v521_v0  ;;  %p448_p6 = scmp.lt.s32.totalorder (!%p374_p3), %s2832_s18, 15  ;;  %s2189_s19 = sadd.s32 (!%p374_p3), 4294967295, %s2832_s18  ;;  %v779_v1 = vld [vmem:[%s3526_s5] sm:$0xff] (!%p374_p3)  ;;  %vm529_vm1 = vcmask (!%p374_p3), 31744   ;;  %v781_v7 = vld [vmem:[%s3526_s5 + $0x10] sm:$0xff] (!%p374_p3)  ;;  %vm789_vm2 = vcmask (!%p374_p3), 195584  }
   0xb   : > { %2419 = vmatpush3.msk.msra.mxu1 (!%p374_p3), %vm590_vm0, %v521_v0  ;;  %v2570_v3 = vpack.c.bf16 (!%p374_p3), %v780_v2, %v779_v1  ;;  %p458_p7 = scmp.gt.s32.totalorder (!%p374_p3), %s2189_s19, 0  ;;  %p2190_p8 = scmp.lt.s32.totalorder (!%p374_p3), %s2189_s19, 15  ;;  %v2917_v25 = vld [vmem:[%s3525_s4] ss:$0 sm:$0xff] (!%p374_p3)  ;;  %vm2742_vm4 = vmmov (!%p374_p3), 1   ;;  %vm1068_vm6 = vcmask (!%p374_p3), 1040384  }
   0xc   : > { %p1015_p10 = scmp.gt.s32.totalorder (!%p374_p3), %s2724_s30, 0  ;;  %vm2966_vm5 = vmpackc.low (!%p374_p3), %vm590_vm0, %vm2742_vm4  ;;  %vm1277_vm7 = vcmask (!%p374_p3), 1045504   ;;  %vm1188_vm8 = vcmask (!%p374_p3), 1046528   ;;  %s2745_s22 = smov (!%p374_p3), 4   ;;  %vm1382_vm10 = vcmask (!%p374_p3), 64512   ;;  %vm1401_vm11 = vcmask (!%p374_p3), 97280  }
   0xd   : > { %2571 = vmatprep.subr.bf16.mxu1 (!%p374_p3), %v2570_v3  ;;  %p1019_p11 = scmp.lt.s32.totalorder (!%p374_p3), %s2724_s30, 1 }
  0x10   : > { %s3545_s10 = smov (!%p446_p5, %s2728_s10), 1  ;;  %s3547_s19 = smov (!%p458_p7, %s2189_s19), 0 }
  0x11   : > { %s449_s24 = scalar_select %p448_p6, %s2832_s18, 15 }
  0x12   : > { %s2845_s26 = sshll.u32 %s3545_s10, 5  ;;  %s3549_s19 = smov (!%p2190_p8, %s3547_s19), 15 }
  0x13   : > { %s2185_s25 = sshll.u32 %s449_s24, 1  ;;  %s2195_s29 = sshll.u32 %s3549_s19, 1 }
  0x14   : > { %s2848_s27 = sadd.s32 %s2845_s26, %s2185_s25  ;;  %s466_s10 = sadd.s32 %s2195_s29, %s2845_s26 }
  0x15   : > { %s2187_s28 = sshll.u32 %s2848_s27, 3  ;;  %s2197_s21 = sshll.u32 %s466_s10, 3 }
  0x16   : > { %s2856_s20 = scalar_lea.vmem %s3521_s0, %s2187_s28  ;;  %s468_s24 = scalar_lea.vmem %s3522_s1, %s2197_s21 }
  0x17   : > { %v517_v4 = vld [vmem:[%s468_s24] sm:$0xff]  ;;  %v518_v5 = vld [vmem:[%s468_s24 + $0x8] sm:$0xff]  ;;  %v503_v9 = vld [vmem:[%s2856_s20 + $0x10] sm:$0xff]  ;;  %s2319_s29 = sadd.s32 8, %s2832_s18  ;;  %s2744_s21 = smov 8  }
  0x18   : > { %v501_v6 = vld [vmem:[%s2856_s20] sm:$0xff]  ;;  %2420 = vmatprep.mubr.msk.f32.mxu1 %vm529_vm1, %v517_v4  ;;  %v502_v8 = vld [vmem:[%s2856_s20 + $0x8] sm:$0xff]  ;;  %v504_v10 = vld [vmem:[%s2856_s20 + $0x18] sm:$0xff]  ;;  %p2876_p9 = scmp.lt.s32.totalorder %s2319_s29, 15 }
  0x19   : > { %2421 = vmatmul.mubr.msk.f32.vlgmr.msra.gmra.mrb[0].mxu1 %vm529_vm1, %v518_v5  ;;  %v505_v11 = vld [vmem:[%s2856_s20 + $0x20] sm:$0xff]  ;;  %v506_v12 = vld [vmem:[%s2856_s20 + $0x28] sm:$0xff]  ;;  %v507_v13 = vld [vmem:[%s2856_s20 + $0x30] sm:$0xff]  ;;  %s1016_s19 = scalar_select %p1015_p10, 1, 0 }
  0x1a   : > { %2423 = vmatprep.mubr.msk.f32.mxu1 %vm529_vm1, %v501_v6  ;;  %2573 = vmatpush3.bf16.msra.mxu1 %v2570_v3  ;;  %s3551_s29 = smov (!%p2876_p9, %s2319_s29), 15  ;;  %v508_v14 = vld [vmem:[%s2856_s20 + $0x38] sm:$0xff]  ;;  %v509_v15 = vld [vmem:[%s2856_s20 + $0x40] sm:$0xff]  ;;  %v510_v16 = vld [vmem:[%s2856_s20 + $0x48] sm:$0xff] }
  0x1b   : > { %2454 = vmatprep.subr.mxu1 %v781_v7  ;;  %s3553_s29 = smov (!%p2876_p9, %s3551_s29), 15  ;;  %v511_v17 = vld [vmem:[%s2856_s20 + $0x50] sm:$0xff]  ;;  %v512_v18 = vld [vmem:[%s2856_s20 + $0x58] sm:$0xff]  ;;  %v513_v19 = vld [vmem:[%s2856_s20 + $0x60] sm:$0xff] }
  0x1c   : > { %s2202_s18 = sshll.u32 %s3553_s29, 1  ;;  %v514_v20 = vld [vmem:[%s2856_s20 + $0x68] sm:$0xff]  ;;  %v515_v21 = vld [vmem:[%s2856_s20 + $0x70] sm:$0xff]  ;;  %v516_v22 = vld [vmem:[%s2856_s20 + $0x78] sm:$0xff] }
  0x1d   : > { %2424 = vmatmul.mubr.msk.f32.gmra.mrb[2].mxu1 %vm529_vm1, %v502_v8  ;;  %s483_s17 = sadd.s32 %s2202_s18, %s2845_s26 }
  0x1e   : > { %2426 = vmatprep.mubr.msk.f32.mxu1 %vm529_vm1, %v503_v9  ;;  %2455 = vmatpush3.msra.mxu1 %v781_v7  ;;  %s2204_s10 = sshll.u32 %s483_s17, 3 }
  0x1f   : > { %s485_s23 = scalar_lea.vmem %s3523_s2, %s2204_s10 }
  0x20   : > { %v519_v23 = vld [vmem:[%s485_s23] sm:$0xff]  ;;  %v520_v24 = vld [vmem:[%s485_s23 + $0x8] sm:$0xff]  ;;  %s3065_s23 = scalar_select %p1019_p11, 1, 0 }
  0x21   : > { %2427 = vmatmul.mubr.msk.f32.gmra.mrb[4].mxu1 %vm529_vm1, %v504_v10 }
  0x22   : > { %2429 = vmatprep.mubr.msk.f32.mxu1 %vm529_vm1, %v505_v11 }
  0x25   : > { %2430 = vmatmul.mubr.msk.f32.gmra.mrb[6].mxu1 %vm529_vm1, %v506_v12 }
  0x26   : > { %2432 = vmatprep.mubr.msk.f32.mxu1 %vm529_vm1, %v507_v13 }
  0x29   : > { %2433 = vmatmul.mubr.msk.f32.gmra.mrb[8].mxu1 %vm529_vm1, %v508_v14 }
  0x2a   : > { %2435 = vmatprep.mubr.msk.f32.mxu1 %vm529_vm1, %v509_v15 }
  0x2d   : > { %2436 = vmatmul.mubr.msk.f32.gmra.mrb[10].mxu1 %vm529_vm1, %v510_v16 }
  0x2e   : > { %2438 = vmatprep.mubr.msk.f32.mxu1 %vm529_vm1, %v511_v17 }
  0x31   : > { %2439 = vmatmul.mubr.msk.f32.gmra.mrb[12].mxu1 %vm529_vm1, %v512_v18 }
  0x32   : > { %2441 = vmatprep.mubr.msk.f32.mxu1 %vm529_vm1, %v513_v19 }
  0x35   : > { %2442 = vmatmul.mubr.msk.f32.gmra.mrb[14].mxu1 %vm529_vm1, %v514_v20 }
  0x36   : > { %2444 = vmatprep.mubr.msk.f32.mxu1 %vm529_vm1, %v515_v21 }
  0x39   : > { %2445 = vmatmul.mubr.msk.f32.gmra.mrb[16].mxu1 %vm529_vm1, %v516_v22  ;;  %v1017_v22 = vstv %s1016_s19 }
  0x3a   : > { %2447 = vmatprep.mubr.msk.f32.mxu1 %vm529_vm1, %v519_v23  ;;  %vm1018_vm3 = vcmp.eq.s32.totalorder %v1017_v22, 1  ;;  %v2963_v23 = vld [vmem:[%s3527_s6] ss:$0 sm:$0xff] }
  0x3d   : > { %2448 = vmatmul.mubr.msk.f32.gmra.mrb[18].mxu1 %vm529_vm1, %v520_v24 }
  0xec   : > { %v2422_v26 = vpop.f32.mrb[0].mxu1 }
  0xed   : > { %v666_v27 = vadd.f32 %v2422_v26, %v2917_v25  ;;  %v660_v28 = vpop.f32.mrb[1].mxu1  ;;  %v2743_v26 = vmov 0.0  }
  0xee   : > { %v661_v29 = vadd.f32 %v2917_v25, %v660_v28  ;;  %v1399_v28 = vld [vmem:[%s3528_s7] sm:$0xff] }
  0xef   : > { %v760_v32 = vmax.f32 %v666_v27, 0.0  ;;  %v2252_v27 = vsel %vm1018_vm3, 1.0, %v2743_v26 }
  0xf0   : > { %v759_v30 = vmax.f32 %v661_v29, 0.0  ;;  %v2425_v31 = vpop.f32.mrb[2].mxu1  ;;  %v1400_v29 = vld [vmem:[%s3528_s7 + $0x8] sm:$0xf] }
  0xf1   : > { %v676_v33 = vadd.f32 %v2425_v31, %v2917_v25  ;;  %v670_v34 = vpop.f32.mrb[3].mxu1 }
  0xf2   : > { %2456 = vmatprep.mubr.msk.f32.mxu1 %vm789_vm2, %v759_v30  ;;  %v671_v35 = vadd.f32 %v2917_v25, %v670_v34 }
  0xf3   : > { %v762_v36 = vmax.f32 %v676_v33, 0.0  ;;  %2457 = vmatmul.mubr.msk.f32.vlgmr.msra.gmra.mrb[20].mxu1 %vm789_vm2, %v760_v32  ;;  %v2574_v32 = vpack.c.bf16 %v1400_v29, %v1399_v28 }
  0xf4   : > { %v761_v37 = vmax.f32 %v671_v35, 0.0  ;;  %v2428_v38 = vpop.f32.mrb[4].mxu1 }
  0xf5   : > { %v686_v39 = vadd.f32 %v2428_v38, %v2917_v25  ;;  %v680_v40 = vpop.f32.mrb[5].mxu1  ;;  %2576 = vmatprep.subr.msk.bf16.mxu0 %vm2966_vm5, %v2574_v32  ;;  %2592 = vmatprep.subr.msk.bf16.mxu1 %vm2966_vm5, %v2574_v32 }
  0xf6   : > { %2459 = vmatprep.mubr.msk.f32.mxu1 %vm789_vm2, %v761_v37  ;;  %v681_v41 = vadd.f32 %v2917_v25, %v680_v40  ;;  %2579 = vmatpush3.bf16.msk.msra.mxu0 %vm2966_vm5, %v2574_v32 }
  0xf7   : > { %2460 = vmatmul.mubr.msk.f32.gmra.mrb[22].mxu1 %vm789_vm2, %v762_v36  ;;  %v764_v42 = vmax.f32 %v686_v39, 0.0 }
  0xf8   : > { %v763_v43 = vmax.f32 %v681_v41, 0.0  ;;  %v2431_v44 = vpop.f32.mrb[6].mxu1  ;;  %2593 = vmatpush3.bf16.msk.msra.mxu1 %vm2966_vm5, %v2574_v32 }
  0xf9   : > { %v696_v45 = vadd.f32 %v2431_v44, %v2917_v25  ;;  %v690_v46 = vpop.f32.mrb[7].mxu1 }
  0xfa   : > { %2462 = vmatprep.mubr.msk.f32.mxu1 %vm789_vm2, %v763_v43  ;;  %v691_v47 = vadd.f32 %v2917_v25, %v690_v46 }
  0xfb   : > { %2463 = vmatmul.mubr.msk.f32.gmra.mrb[24].mxu1 %vm789_vm2, %v764_v42  ;;  %v766_v48 = vmax.f32 %v696_v45, 0.0 }
  0xfc   : > { %v765_v49 = vmax.f32 %v691_v47, 0.0  ;;  %v2434_v50 = vpop.f32.mrb[8].mxu1 }
  0xfd   : > { %v706_v51 = vadd.f32 %v2434_v50, %v2917_v25  ;;  %v700_v52 = vpop.f32.mrb[9].mxu1 }
  0xfe   : > { %2465 = vmatprep.mubr.msk.f32.mxu1 %vm789_vm2, %v765_v49  ;;  %v701_v53 = vadd.f32 %v2917_v25, %v700_v52 }
  0xff   : > { %2466 = vmatmul.mubr.msk.f32.gmra.mrb[26].mxu1 %vm789_vm2, %v766_v48  ;;  %v768_v54 = vmax.f32 %v706_v51, 0.0 }
 0x100   : > { %v767_v55 = vmax.f32 %v701_v53, 0.0  ;;  %v2437_v56 = vpop.f32.mrb[10].mxu1 }
 0x101   : > { %v716_v57 = vadd.f32 %v2437_v56, %v2917_v25  ;;  %v710_v58 = vpop.f32.mrb[11].mxu1 }
 0x102   : > { %2468 = vmatprep.mubr.msk.f32.mxu1 %vm789_vm2, %v767_v55  ;;  %v711_v59 = vadd.f32 %v2917_v25, %v710_v58 }
 0x103   : > { %2469 = vmatmul.mubr.msk.f32.gmra.mrb[28].mxu1 %vm789_vm2, %v768_v54  ;;  %v770_v60 = vmax.f32 %v716_v57, 0.0 }
 0x104   : > { %v769_v61 = vmax.f32 %v711_v59, 0.0  ;;  %v2440_v62 = vpop.f32.mrb[12].mxu1 }
 0x105   : > { %v726_v63 = vadd.f32 %v2440_v62, %v2917_v25  ;;  %v720_v0 = vpop.f32.mrb[13].mxu1 }
 0x106   : > { %2471 = vmatprep.mubr.msk.f32.mxu1 %vm789_vm2, %v769_v61  ;;  %v721_v1 = vadd.f32 %v2917_v25, %v720_v0 }
 0x107   : > { %2472 = vmatmul.mubr.msk.f32.gmra.mrb[30].mxu1 %vm789_vm2, %v770_v60  ;;  %v772_v2 = vmax.f32 %v726_v63, 0.0 }
 0x108   : > { %v771_v3 = vmax.f32 %v721_v1, 0.0  ;;  %v2443_v4 = vpop.f32.mrb[14].mxu1 }
 0x109   : > { %v736_v5 = vadd.f32 %v2443_v4, %v2917_v25  ;;  %v730_v6 = vpop.f32.mrb[15].mxu1 }
 0x10a   : > { %2474 = vmatprep.mubr.msk.f32.mxu1 %vm789_vm2, %v771_v3  ;;  %v731_v7 = vadd.f32 %v2917_v25, %v730_v6 }
 0x10b   : > { %2475 = vmatmul.mubr.msk.f32.gmra.mrb[32].mxu1 %vm789_vm2, %v772_v2  ;;  %v774_v8 = vmax.f32 %v736_v5, 0.0 }
 0x10c   : > { %v773_v9 = vmax.f32 %v731_v7, 0.0  ;;  %v2446_v10 = vpop.f32.mrb[16].mxu1 }
 0x10d   : > { %v746_v11 = vadd.f32 %v2446_v10, %v2917_v25  ;;  %v740_v12 = vpop.f32.mrb[17].mxu1 }
 0x10e   : > { %2477 = vmatprep.mubr.msk.f32.mxu1 %vm789_vm2, %v773_v9  ;;  %v741_v13 = vadd.f32 %v2917_v25, %v740_v12 }
 0x10f   : > { %2478 = vmatmul.mubr.msk.f32.gmra.mrb[34].mxu1 %vm789_vm2, %v774_v8  ;;  %v776_v14 = vmax.f32 %v746_v11, 0.0 }
 0x110   : > { %v775_v15 = vmax.f32 %v741_v13, 0.0  ;;  %v2449_v16 = vpop.f32.mrb[18].mxu1 }
 0x111   : > { %v756_v17 = vadd.f32 %v2449_v16, %v2917_v25  ;;  %v750_v18 = vpop.f32.mrb[19].mxu1 }
 0x112   : > { %2480 = vmatprep.mubr.msk.f32.mxu1 %vm789_vm2, %v775_v15  ;;  %v751_v19 = vadd.f32 %v2917_v25, %v750_v18 }
 0x113   : > { %v778_v20 = vmax.f32 %v756_v17, 0.0  ;;  %2481 = vmatmul.mubr.msk.f32.gmra.mrb[36].mxu1 %vm789_vm2, %v776_v14 }
 0x114   : > { %v777_v21 = vmax.f32 %v751_v19, 0.0 }
 0x116   : > { %2483 = vmatprep.mubr.msk.f32.mxu1 %vm789_vm2, %v777_v21 }
 0x117   : > { %2484 = vmatmul.mubr.msk.f32.gmra.mrb[38].mxu1 %vm789_vm2, %v778_v20 }
 0x1c6   : > { %v2458_v25 = vpop.f32.mrb[20].mxu1 }
 0x1c7   : > { %v922_v30 = vadd.f32 %v2458_v25, %v2963_v23  ;;  %v916_v31 = vpop.f32.mrb[21].mxu1 }
 0x1c8   : > { %v917_v33 = vadd.f32 %v2963_v23, %v916_v31 }
 0x1c9   : > { %v1029_v34 = vmul.f32 %v2252_v27, %v922_v30 }
 0x1ca   : > { %v1028_v35 = vmul.f32 %v2252_v27, %v917_v33  ;;  %v2461_v36 = vpop.f32.mrb[22].mxu1 }
 0x1cb   : > { %v1070_v37 = vrot.slane %v1029_v34, 7  ;;  %v932_v38 = vadd.f32 %v2461_v36, %v2963_v23  ;;  %v926_v39 = vpop.f32.mrb[23].mxu1 }
 0x1cc   : > { %v1069_v40 = vrot.slane %v1028_v35, 7  ;;  %v927_v41 = vadd.f32 %v2963_v23, %v926_v39 }
 0x1cd   : > { %v1073_v42 = vrot.slane %v932_v38, 7  ;;  %v1139_v46 = vsel %vm1068_vm6, %v1070_v37, 0.0 }
 0x1ce   : > { %v2990_v43 = vsel %vm1068_vm6, 0.0, %v1069_v40  ;;  %v1072_v44 = vrot.slane %v927_v41, 7  ;;  %v2464_v45 = vpop.f32.mrb[24].mxu1  ;;  %v2994_v47 = vsel %vm1068_vm6, %v1069_v40, %v1070_v37  ;;  %v1192_v54 = vrot.slane %v1139_v46, 1 }
 0x1cf   : > { %v1278_v48 = vrot.slane %v2990_v43, 2  ;;  %v1189_v49 = vrot.slane %v2990_v43, 1  ;;  %v936_v50 = vpop.f32.mrb[25].mxu1  ;;  %v1279_v52 = vrot.slane %v2994_v47, 2  ;;  %v1190_v53 = vrot.slane %v2994_v47, 1 }
 0x1d0   : > { %v2999_v51 = vsel %vm1068_vm6, %v1072_v44, %v1073_v42  ;;  %v942_v55 = vadd.f32 %v2464_v45, %v2963_v23  ;;  %v937_v56 = vadd.f32 %v2963_v23, %v936_v50  ;;  %v1281_v58 = vrot.slane %v1139_v46, 2 }
 0x1d1   : > { %v1140_v59 = vsel %vm1068_vm6, %v1073_v42, 0.0  ;;  %v1280_v60 = vsel %vm1277_vm7, %v1278_v48, %v1279_v52  ;;  %v1191_v61 = vsel %vm1188_vm8, %v1189_v49, %v1190_v53  ;;  %v3009_v63 = vsel %vm1068_vm6, 0.0, %v1072_v44 }
 0x1d2   : > { %v2467_v57 = vpop.f32.mrb[26].mxu1  ;;  %1318 = vrot.lane.b32.xlu1 %v1280_v60, %s2744_s21  ;;  %1229 = vrot.lane.b32.xlu0 %v1191_v61, %s2745_s22  ;;  %v1076_v0 = vrot.slane %v942_v55, 7  ;;  %v1075_v1 = vrot.slane %v937_v56, 7  ;;  %v1197_v4 = vrot.slane %v1140_v59, 1  ;;  %v1194_v7 = vrot.slane %v3009_v63, 1 }
 0x1d3   : > { %v946_v62 = vpop.f32.mrb[27].mxu1  ;;  %v952_v2 = vadd.f32 %v2467_v57, %v2963_v23  ;;  %v1282_v8 = vsel %vm1277_vm7, %v1279_v52, %v1281_v58  ;;  %v1193_v9 = vsel %vm1188_vm8, %v1190_v53, %v1192_v54  ;;  %v1195_v10 = vrot.slane %v2999_v51, 1  ;;  %v2272_v57 = vld [vmem:[%s3528_s7 + $0x10] sm:$0xff]  ;;  %v2273_v58 = vld [vmem:[%s3528_s7 + $0x18] sm:$0xf] }
 0x1d4   : > { %v947_v3 = vadd.f32 %v2963_v23, %v946_v62  ;;  %v3016_v5 = vsel %vm1068_vm6, %v1075_v1, %v1076_v0  ;;  %v1286_v16 = vrot.slane %v1140_v59, 2  ;;  %v1284_v18 = vrot.slane %v2999_v51, 2 }
 0x1d5   : > { %v1079_v12 = vrot.slane %v952_v2, 7  ;;  %v1283_v20 = vrot.slane %v3009_v63, 2  ;;  %v1198_v21 = vsel %vm1188_vm8, %v1195_v10, %v1197_v4  ;;  %v1196_v22 = vsel %vm1188_vm8, %v1194_v7, %v1195_v10 }
 0x1d6   : > { %v2470_v6 = vpop.f32.mrb[28].mxu1  ;;  %1320 = vrot.lane.b32.xlu1 %v1282_v8, %s2744_s21  ;;  %1231 = vrot.lane.b32.xlu0 %v1193_v9, %s2745_s22  ;;  %v1078_v13 = vrot.slane %v947_v3, 7  ;;  %v1141_v27 = vsel %vm1068_vm6, %v1076_v0, 0.0  ;;  %v3039_v28 = vsel %vm1068_vm6, 0.0, %v1075_v1  ;;  %v1287_v33 = vsel %vm1277_vm7, %v1284_v18, %v1286_v16 }
 0x1d7   : > { %v956_v11 = vpop.f32.mrb[29].mxu1  ;;  %v3025_v14 = vadd.f32 %v2470_v6, %v2963_v23  ;;  %v1202_v36 = vrot.slane %v1141_v27, 1  ;;  %v1199_v37 = vrot.slane %v3039_v28, 1  ;;  %v1285_v38 = vsel %vm1277_vm7, %v1283_v20, %v1284_v18 }
 0x1d8   : > { %v3028_v15 = vadd.f32 %v2963_v23, %v956_v11  ;;  %v3031_v17 = vsel %vm1068_vm6, %v1078_v13, %v1079_v12  ;;  %v1200_v39 = vrot.slane %v3016_v5, 1  ;;  %v1291_v44 = vrot.slane %v1141_v27, 2 }
 0x1d9   : > { %v1082_v29 = vrot.slane %v3025_v14, 7  ;;  %v1288_v45 = vrot.slane %v3039_v28, 2  ;;  %v1142_v46 = vsel %vm1068_vm6, %v1079_v12, 0.0  ;;  %v3080_v52 = vsel %vm1068_vm6, 0.0, %v1078_v13 }
 0x1da   : > { %v2473_v19 = vpop.f32.mrb[30].mxu1  ;;  %1235 = vrot.lane.b32.xlu1 %v1198_v21, %s2745_s22  ;;  %1233 = vrot.lane.b32.xlu0 %v1196_v22, %s2745_s22  ;;  %v1081_v30 = vrot.slane %v3028_v15, 7  ;;  %v1203_v53 = vsel %vm1188_vm8, %v1200_v39, %v1202_v36  ;;  %v1201_v54 = vsel %vm1188_vm8, %v1199_v37, %v1200_v39  ;;  %v1289_v55 = vrot.slane %v3016_v5, 2 }
 0x1db   : > { %v966_v25 = vpop.f32.mrb[31].mxu1  ;;  %v3046_v31 = vadd.f32 %v2473_v19, %v2963_v23  ;;  %v1207_v59 = vrot.slane %v1142_v46, 1  ;;  %v1021_v62 = vstv %s3065_s23  ;;  %v1204_v0 = vrot.slane %v3080_v52, 1  ;;  %s3440_s23 = scalar_lea.vmem %s3530_s9, %s2187_s28 }
 0x1dc   : > { %v3049_v32 = vadd.f32 %v2963_v23, %v966_v25  ;;  %v3054_v34 = vsel %vm1068_vm6, %v1081_v30, %v1082_v29  ;;  %v3105_v4 = vpack.c.bf16 %v2273_v58, %v2272_v57  ;;  %v1292_v6 = vsel %vm1277_vm7, %v1289_v55, %v1291_v44 }
 0x1dd   : > { %v1085_v41 = vrot.slane %v3046_v31, 7  ;;  %v1290_v7 = vsel %vm1277_vm7, %v1288_v45, %v1289_v55  ;;  %v1205_v8 = vrot.slane %v3031_v17, 1  ;;  %vm1022_vm9 = vcmp.eq.s32.totalorder %v1021_v62, 1 }
 0x1de   : > { %v2476_v35 = vpop.f32.mrb[32].mxu1  ;;  %1324 = vrot.lane.b32.xlu1 %v1287_v33, %s2744_s21  ;;  %1322 = vrot.lane.b32.xlu0 %v1285_v38, %s2744_s21  ;;  %v1084_v42 = vrot.slane %v3049_v32, 7  ;;  %v1296_v15 = vrot.slane %v1142_v46, 2  ;;  %v1293_v16 = vrot.slane %v3080_v52, 2  ;;  %v1143_v18 = vsel %vm1068_vm6, %v1082_v29, 0.0 }
 0x1df   : > { %v976_v40 = vpop.f32.mrb[33].mxu1  ;;  %v3077_v49 = vadd.f32 %v2476_v35, %v2963_v23  ;;  %2582 = vmatprep.subr.msk.bf16.mxu0 %vm2966_vm5, %v3105_v4  ;;  %v3129_v19 = vsel %vm1068_vm6, 0.0, %v1081_v30  ;;  %v1208_v21 = vsel %vm1188_vm8, %v1205_v8, %v1207_v59  ;;  %v1206_v22 = vsel %vm1188_vm8, %v1204_v0, %v1205_v8 }
 0x1e0   : > { %v3074_v48 = vsel %vm1068_vm6, %v1084_v42, %v1085_v41  ;;  %v3095_v61 = vadd.f32 %v2963_v23, %v976_v40  ;;  %v1294_v25 = vrot.slane %v3031_v17, 2  ;;  %v2253_v29 = vsel %vm1022_vm9, 1.0, %v2743_v26 }
 0x1e1   : > { %v1088_v60 = vrot.slane %v3077_v49, 7  ;;  %v1212_v30 = vrot.slane %v1143_v18, 1  ;;  %v1301_v35 = vrot.slane %v1143_v18, 2  ;;  %v1209_v38 = vrot.slane %v3129_v19, 1 }
 0x1e2   : > { %v2479_v50 = vpop.f32.mrb[34].mxu1  ;;  %1239 = vrot.lane.b32.xlu1 %v1203_v53, %s2745_s22  ;;  %1237 = vrot.lane.b32.xlu0 %v1201_v54, %s2745_s22  ;;  %v1087_v9 = vrot.slane %v3095_v61, 7  ;;  %v1210_v39 = vrot.slane %v3054_v34, 1  ;;  %v1297_v45 = vsel %vm1277_vm7, %v1294_v25, %v1296_v15  ;;  %v1295_v46 = vsel %vm1277_vm7, %v1293_v16, %v1294_v25 }
 0x1e3   : > { %v986_v56 = vpop.f32.mrb[35].mxu1  ;;  %v3100_v1 = vadd.f32 %v2479_v50, %v2963_v23  ;;  %v1144_v53 = vsel %vm1068_vm6, %v1085_v41, 0.0  ;;  %v3158_v54 = vsel %vm1068_vm6, 0.0, %v1084_v42  ;;  %v1298_v32 = vrot.slane %v3129_v19, 2 }
 0x1e4   : > { %v3103_v2 = vadd.f32 %v2963_v23, %v986_v56  ;;  %v3119_v12 = vsel %vm1068_vm6, %v1087_v9, %v1088_v60  ;;  %v1213_v42 = vsel %vm1188_vm8, %v1210_v39, %v1212_v30  ;;  %v1211_v59 = vsel %vm1188_vm8, %v1209_v38, %v1210_v39 }
 0x1e5   : > { %v1091_v11 = vrot.slane %v3100_v1, 7  ;;  %v1145_v38 = vsel %vm1068_vm6, %v1088_v60, 0.0  ;;  %v3207_v39 = vsel %vm1068_vm6, 0.0, %v1087_v9  ;;  %v1220_v61 = vrot.slane %v3119_v12, 1 }
 0x1e6   : > { %v2482_v3 = vpop.f32.mrb[36].mxu1  ;;  %1328 = vrot.lane.b32.xlu1 %v1292_v6, %s2744_s21  ;;  %1326 = vrot.lane.b32.xlu0 %v1290_v7, %s2744_s21  ;;  %v1090_v13 = vrot.slane %v3103_v2, 7  ;;  %v1217_v6 = vrot.slane %v1144_v53, 1  ;;  %v1214_v7 = vrot.slane %v3158_v54, 1  ;;  %v1222_v49 = vrot.slane %v1145_v38, 1 }
 0x1e7   : > { %v996_v10 = vpop.f32.mrb[37].mxu1  ;;  %v1002_v14 = vadd.f32 %v2482_v3, %v2963_v23  ;;  %v1219_v60 = vrot.slane %v3207_v39, 1 }
 0x1e8   : > { %v3139_v27 = vsel %vm1068_vm6, %v1090_v13, %v1091_v11  ;;  %v997_v37 = vadd.f32 %v2963_v23, %v996_v10 }
 0x1e9   : > { %v1094_v36 = vrot.slane %v1002_v14, 7 }
 0x1ea   : > { %v2485_v20 = vpop.f32.mrb[38].mxu1  ;;  %1243 = vrot.lane.b32.xlu1 %v1208_v21, %s2745_s22  ;;  %1241 = vrot.lane.b32.xlu0 %v1206_v22, %s2745_s22  ;;  %v1093_v26 = vrot.slane %v997_v37, 7  ;;  %v1306_v37 = vrot.slane %v1144_v53, 2  ;;  %v1308_v53 = vrot.slane %v3207_v39, 2 }
 0x1eb   : > { %v1006_v33 = vpop.f32.mrb[39].mxu1  ;;  %v1012_v40 = vadd.f32 %v2485_v20, %v2963_v23  ;;  %v1147_v50 = vsel %vm1068_vm6, %v1094_v36, 0.0 }
 0x1ec   : > { %v1007_v44 = vadd.f32 %v2963_v23, %v1006_v33  ;;  %v1299_v23 = vrot.slane %v3054_v34, 2  ;;  %v1619_v55 = vrot.slane %v1147_v50, 1  ;;  %v1630_v56 = vrot.slane %v1147_v50, 2 }
 0x1ed   : > { %v3164_v57 = vsel %vm1068_vm6, %v1093_v26, %v1094_v36  ;;  %v3167_v31 = vsel %vm1068_vm6, 0.0, %v1093_v26  ;;  %v1047_v41 = vmul.f32 %v2253_v29, %v1012_v40  ;;  %v1215_v33 = vrot.slane %v3074_v48, 1 }
 0x1ee   : > { %1332 = vrot.lane.b32.xlu1 %v1297_v45, %s2744_s21  ;;  %1330 = vrot.lane.b32.xlu0 %v1295_v46, %s2744_s21  ;;  %v1046_v58 = vmul.f32 %v2253_v29, %v1007_v44  ;;  %v1617_v0 = vrot.slane %v3164_v57, 1  ;;  %v1628_v3 = vrot.slane %v3164_v57, 2  ;;  %v1302_v10 = vsel %vm1277_vm7, %v1299_v23, %v1301_v35 }
 0x1ef   : > { %v1097_v62 = vrot.slane %v1047_v41, 7  ;;  %v1300_v25 = vsel %vm1277_vm7, %v1298_v32, %v1299_v23  ;;  %v1303_v40 = vrot.slane %v3158_v54, 2  ;;  %v1218_v44 = vsel %vm1188_vm8, %v1215_v33, %v1217_v6 }
 0x1f0   : > { %v1096_v8 = vrot.slane %v1046_v58, 7  ;;  %v1620_v15 = vsel %vm1188_vm8, %v1617_v0, %v1619_v55  ;;  %v3185_v16 = vsel %vm1277_vm7, %v1628_v3, %v1630_v56  ;;  %v1216_v45 = vsel %vm1188_vm8, %v1214_v7, %v1215_v33 }
 0x1f1   : > { %v1148_v14 = vsel %vm1068_vm6, %v1097_v62, 0.0  ;;  %v1304_v46 = vrot.slane %v3074_v48, 2  ;;  %v1311_v26 = vrot.slane %v1145_v38, 2  ;;  %v1146_v23 = vsel %vm1068_vm6, %v1091_v11, 0.0 }
 0x1f2   : > { %1247 = vrot.lane.b32.xlu1 %v1213_v42, %s2745_s22  ;;  %1245 = vrot.lane.b32.xlu0 %v1211_v59, %s2745_s22  ;;  %v1820_v18 = vrot.slane %v1148_v14, 1  ;;  %v1831_v20 = vrot.slane %v1148_v14, 2  ;;  %v3188_v21 = vsel %vm1068_vm6, %v1096_v8, %v1097_v62  ;;  %v3191_v22 = vsel %vm1068_vm6, 0.0, %v1096_v8 }
 0x1f3   : > { %v1818_v29 = vrot.slane %v3188_v21, 1  ;;  %v1829_v30 = vrot.slane %v3188_v21, 2  ;;  %v1307_v9 = vsel %vm1277_vm7, %v1304_v46, %v1306_v37  ;;  %v1305_v50 = vsel %vm1277_vm7, %v1303_v40, %v1304_v46 }
 0x1f4   : > { %v1223_v55 = vsel %vm1188_vm8, %v1220_v61, %v1222_v49  ;;  %v1221_v56 = vsel %vm1188_vm8, %v1219_v60, %v1220_v61  ;;  %v1309_v41 = vrot.slane %v3119_v12, 2  ;;  %v3231_v32 = vsel %vm1068_vm6, 0.0, %v1090_v13 }
 0x1f5   : > { %v1821_v35 = vsel %vm1188_vm8, %v1818_v29, %v1820_v18  ;;  %v1832_v36 = vsel %vm1277_vm7, %v1829_v30, %v1831_v20  ;;  %v1227_v42 = vrot.slane %v1146_v23, 1  ;;  %v1224_v1 = vrot.slane %v3231_v32, 1 }
 0x1f6   : > { %1336 = vrot.lane.b32.xlu1 %v1302_v10, %s2744_s21  ;;  %1334 = vrot.lane.b32.xlu0 %v1300_v25, %s2744_s21  ;;  %v1312_v11 = vsel %vm1277_vm7, %v1309_v41, %v1311_v26  ;;  %v1310_v58 = vsel %vm1277_vm7, %v1308_v53, %v1309_v41  ;;  %v1225_v59 = vrot.slane %v3139_v27, 1  ;;  %v1316_v62 = vrot.slane %v1146_v23, 2 }
 0x1f7   : > { %v1313_v2 = vrot.slane %v3231_v32, 2  ;;  %v1314_v7 = vrot.slane %v3139_v27, 2  ;;  %v1616_v8 = vrot.slane %v3167_v31, 1  ;;  %v1627_v18 = vrot.slane %v3167_v31, 2 }
 0x1f8   : > { %v1228_v13 = vsel %vm1188_vm8, %v1225_v59, %v1227_v42  ;;  %v1226_v6 = vsel %vm1188_vm8, %v1224_v1, %v1225_v59  ;;  %v1817_v33 = vrot.slane %v3191_v22, 1  ;;  %v1828_v38 = vrot.slane %v3191_v22, 2 }
 0x1f9   : > { %v1317_v10 = vsel %vm1277_vm7, %v1314_v7, %v1316_v62  ;;  %v1315_v14 = vsel %vm1277_vm7, %v1313_v2, %v1314_v7  ;;  %v1618_v20 = vsel %vm1188_vm8, %v1616_v8, %v1617_v0  ;;  %v1629_v25 = vsel %vm1277_vm7, %v1627_v18, %v1628_v3 }
 0x1fa   : > { %1251 = vrot.lane.b32.xlu1 %v1218_v44, %s2745_s22  ;;  %1249 = vrot.lane.b32.xlu0 %v1216_v45, %s2745_s22  ;;  %v1819_v37 = vsel %vm1188_vm8, %v1817_v33, %v1818_v29  ;;  %v1830_v0 = vsel %vm1277_vm7, %v1828_v38, %v1829_v30  ;;  %v2292_v30 = vld [vmem:[%s3528_s7 + $0x28] sm:$0xf] }
 0x1fe   : > { %1340 = vrot.lane.b32.xlu1 %v1307_v9, %s2744_s21  ;;  %1338 = vrot.lane.b32.xlu0 %v1305_v50, %s2744_s21 }
 0x202   : > { %1255 = vrot.lane.b32.xlu1 %v1223_v55, %s2745_s22  ;;  %1253 = vrot.lane.b32.xlu0 %v1221_v56, %s2745_s22 }
 0x206   : > { %1344 = vrot.lane.b32.xlu1 %v1312_v11, %s2744_s21  ;;  %1342 = vrot.lane.b32.xlu0 %v1310_v58, %s2744_s21 }
 0x20a   : > { %1259 = vrot.lane.b32.xlu1 %v1228_v13, %s2745_s22  ;;  %1257 = vrot.lane.b32.xlu0 %v1226_v6, %s2745_s22 }
 0x20e   : > { %1348 = vrot.lane.b32.xlu1 %v1317_v10, %s2744_s21  ;;  %1346 = vrot.lane.b32.xlu0 %v1315_v14, %s2744_s21 }
 0x212   : > { %1623 = vrot.lane.b32.xlu1 %v1620_v15, %s2745_s22  ;;  %1621 = vrot.lane.b32.xlu0 %v1618_v20, %s2745_s22 }
 0x216   : > { %1634 = vrot.lane.b32.xlu1 %v3185_v16, %s2744_s21  ;;  %1632 = vrot.lane.b32.xlu0 %v1629_v25, %s2744_s21 }
 0x21a   : > { %1824 = vrot.lane.b32.xlu1 %v1821_v35, %s2745_s22  ;;  %1822 = vrot.lane.b32.xlu0 %v1819_v37, %s2745_s22  ;;  %v2291_v35 = vld [vmem:[%s3528_s7 + $0x20] sm:$0xff] }
 0x21b   : > { %v2586_v45 = vpack.c.bf16 %v2292_v30, %v2291_v35 }
 0x21e   : > { %1835 = vrot.lane.b32.xlu1 %v1832_v36, %s2744_s21  ;;  %1833 = vrot.lane.b32.xlu0 %v1830_v0, %s2744_s21 }
 0x244   : > { %v1319_v3 = vpop.permute.xlu1 %1318  ;;  %v1230_v15 = vpop.permute.xlu0 %1229 }
 0x245   : > { %v1366_v16 = vsel %vm529_vm1, %v2990_v43, %v1230_v15 }
 0x246   : > { %v1383_v29 = vsel %vm1382_vm10, %v1366_v16, %v1319_v3 }
 0x247   : > { %2490 = vmatprep.mubr.msk.f32.mxu0 %vm1401_vm11, %v1383_v29 }
 0x248   : > { %v1321_v36 = vpop.permute.xlu1 %1320  ;;  %v1232_v40 = vpop.permute.xlu0 %1231 }
 0x249   : > { %v1367_v44 = vsel %vm529_vm1, %v2994_v47, %v1232_v40 }
 0x24a   : > { %v1384_v43 = vsel %vm1382_vm10, %v1367_v44, %v1321_v36 }
 0x24b   : > { %2491 = vmatmul.mubr.msk.f32.vlgmr.msra.gmra.mrb[0].mxu0 %vm1401_vm11, %v1384_v43 }
 0x24c   : > { %v1236_v46 = vpop.permute.xlu1 %1235  ;;  %v1234_v49 = vpop.permute.xlu0 %1233  ;;  %2585 = vmatpush3.bf16.msk.msra.mxu0 %vm2966_vm5, %v3105_v4 }
 0x24d   : > { %2588 = vmatprep.subr.msk.bf16.mxu0 %vm2966_vm5, %v2586_v45  ;;  %v1369_v60 = vsel %vm529_vm1, %v2999_v51, %v1236_v46  ;;  %v1368_v47 = vsel %vm529_vm1, %v3009_v63, %v1234_v49 }
 0x250   : > { %v1325_v61 = vpop.permute.xlu1 %1324  ;;  %v1323_v9 = vpop.permute.xlu0 %1322 }
 0x251   : > { %v1386_v50 = vsel %vm1382_vm10, %v1369_v60, %v1325_v61  ;;  %v1385_v26 = vsel %vm1382_vm10, %v1368_v47, %v1323_v9 }
 0x252   : > { %2493 = vmatprep.mubr.msk.f32.mxu0 %vm1401_vm11, %v1385_v26 }
 0x253   : > { %2494 = vmatmul.mubr.msk.f32.gmra.mrb[2].mxu0 %vm1401_vm11, %v1386_v50 }
 0x254   : > { %v1240_v4 = vpop.permute.xlu1 %1239  ;;  %v1238_v53 = vpop.permute.xlu0 %1237 }
 0x255   : > { %v1371_v23 = vsel %vm529_vm1, %v3016_v5, %v1240_v4  ;;  %v1370_v51 = vsel %vm529_vm1, %v3039_v28, %v1238_v53 }
 0x258   : > { %v1329_v55 = vpop.permute.xlu1 %1328  ;;  %v1327_v63 = vpop.permute.xlu0 %1326 }
 0x259   : > { %v3304_v56 = vsel %vm1382_vm10, %v1371_v23, %v1329_v55  ;;  %v3307_v41 = vsel %vm1382_vm10, %v1370_v51, %v1327_v63  ;;  %v3429_v63 = vld [vmem:[%s3529_s8] ss:$0 sm:$0xff] }
 0x25a   : > { %2496 = vmatprep.mubr.msk.f32.mxu0 %vm1401_vm11, %v3307_v41 }
 0x25b   : > { %2497 = vmatmul.mubr.msk.f32.gmra.mrb[4].mxu0 %vm1401_vm11, %v3304_v56 }
 0x25c   : > { %v1244_v42 = vpop.permute.xlu1 %1243  ;;  %v1242_v1 = vpop.permute.xlu0 %1241 }
 0x25d   : > { %v1373_v5 = vsel %vm529_vm1, %v3031_v17, %v1244_v42  ;;  %v1372_v28 = vsel %vm529_vm1, %v3080_v52, %v1242_v1 }
 0x260   : > { %v1333_v11 = vpop.permute.xlu1 %1332  ;;  %v1331_v58 = vpop.permute.xlu0 %1330 }
 0x261   : > { %v3318_v59 = vsel %vm1382_vm10, %v1373_v5, %v1333_v11  ;;  %v3321_v62 = vsel %vm1382_vm10, %v1372_v28, %v1331_v58  ;;  %v2688_v11 = vld [vmem:[%s2856_s20 + $0x18] sm:$0xff] }
 0x262   : > { %2499 = vmatprep.mubr.msk.f32.mxu0 %vm1401_vm11, %v3321_v62  ;;  %v1159_v58 = vadd.f32 %v2688_v11, %v3429_v63 }
 0x263   : > { %2500 = vmatmul.mubr.msk.f32.gmra.mrb[6].mxu0 %vm1401_vm11, %v3318_v59 }
 0x264   : > { %v1248_v2 = vpop.permute.xlu1 %1247  ;;  %v1246_v13 = vpop.permute.xlu0 %1245 }
 0x265   : > { %v1375_v17 = vsel %vm529_vm1, %v3054_v34, %v1248_v2  ;;  %v1374_v52 = vsel %vm529_vm1, %v3129_v19, %v1246_v13 }
 0x268   : > { %v1337_v6 = vpop.permute.xlu1 %1336  ;;  %v1335_v7 = vpop.permute.xlu0 %1334 }
 0x269   : > { %v3332_v8 = vsel %vm1382_vm10, %v1375_v17, %v1337_v6  ;;  %v1391_v10 = vsel %vm1382_vm10, %v1374_v52, %v1335_v7  ;;  %v2690_v6 = vld [vmem:[%s2856_s20 + $0x28] sm:$0xff] }
 0x26a   : > { %2502 = vmatprep.mubr.msk.f32.mxu0 %vm1401_vm11, %v1391_v10  ;;  %v1161_v7 = vadd.f32 %v2690_v6, %v3429_v63 }
 0x26b   : > { %2503 = vmatmul.mubr.msk.f32.gmra.mrb[8].mxu0 %vm1401_vm11, %v3332_v8 }
 0x26c   : > { %v1252_v14 = vpop.permute.xlu1 %1251  ;;  %v1250_v18 = vpop.permute.xlu0 %1249 }
 0x26d   : > { %v1377_v34 = vsel %vm529_vm1, %v3074_v48, %v1252_v14  ;;  %v1376_v19 = vsel %vm529_vm1, %v3158_v54, %v1250_v18 }
 0x270   : > { %v1341_v20 = vpop.permute.xlu1 %1340  ;;  %v1339_v25 = vpop.permute.xlu0 %1338 }
 0x271   : > { %v1394_v33 = vsel %vm1382_vm10, %v1377_v34, %v1341_v20  ;;  %v1393_v37 = vsel %vm1382_vm10, %v1376_v19, %v1339_v25  ;;  %v2692_v20 = vld [vmem:[%s2856_s20 + $0x38] sm:$0xff] }
 0x272   : > { %2505 = vmatprep.mubr.msk.f32.mxu0 %vm1401_vm11, %v1393_v37  ;;  %v1163_v25 = vadd.f32 %v2692_v20, %v3429_v63 }
 0x273   : > { %2506 = vmatmul.mubr.msk.f32.gmra.mrb[10].mxu0 %vm1401_vm11, %v1394_v33 }
 0x274   : > { %v1256_v38 = vpop.permute.xlu1 %1255  ;;  %2518 = vmatprep.mubr.msk.f32.mxu0 %vm1401_vm11, %v1385_v26  ;;  %v1254_v0 = vpop.permute.xlu0 %1253 }
 0x275   : > { %v1379_v48 = vsel %vm529_vm1, %v3119_v12, %v1256_v38  ;;  %v1378_v54 = vsel %vm529_vm1, %v3207_v39, %v1254_v0 }
 0x277   : > { %2519 = vmatmul.mubr.msk.f32.vlgmr.msra.gmra.mrb[0].mxu0 %vm1401_vm11, %v1386_v50 }
 0x278   : > { %2591 = vmatpush3.bf16.msk.msra.mxu0 %vm2966_vm5, %v2586_v45  ;;  %v1345_v3 = vpop.permute.xlu1 %1344  ;;  %2521 = vmatprep.mubr.msk.f32.mxu0 %vm1401_vm11, %v3307_v41  ;;  %v1343_v15 = vpop.permute.xlu0 %1342 }
 0x279   : > { %v1396_v16 = vsel %vm1382_vm10, %v1379_v48, %v1345_v3  ;;  %v1395_v29 = vsel %vm1382_vm10, %v1378_v54, %v1343_v15  ;;  %v2694_v3 = vld [vmem:[%s2856_s20 + $0x48] sm:$0xff] }
 0x27a   : > { %2508 = vmatprep.mubr.msk.f32.mxu1 %vm1401_vm11, %v1395_v29  ;;  %v1165_v15 = vadd.f32 %v2694_v3, %v3429_v63 }
 0x27b   : > { %2509 = vmatmul.mubr.msk.f32.vlgmr.msra.gmra.mrb[40].mxu1 %vm1401_vm11, %v1396_v16  ;;  %2522 = vmatmul.mubr.msk.f32.gmra.mrb[2].mxu0 %vm1401_vm11, %v3304_v56 }
 0x27c   : > { %v1260_v12 = vpop.permute.xlu1 %1259  ;;  %2524 = vmatprep.mubr.msk.f32.mxu0 %vm1401_vm11, %v3321_v62  ;;  %v1258_v24 = vpop.permute.xlu0 %1257 }
 0x27d   : > { %v1381_v39 = vsel %vm529_vm1, %v3139_v27, %v1260_v12  ;;  %v1380_v35 = vsel %vm529_vm1, %v3231_v32, %v1258_v24 }
 0x27f   : > { %2525 = vmatmul.mubr.msk.f32.gmra.mrb[4].mxu0 %vm1401_vm11, %v3318_v59 }
 0x280   : > { %v1349_v30 = vpop.permute.xlu1 %1348  ;;  %2527 = vmatprep.mubr.msk.f32.mxu0 %vm1401_vm11, %v1391_v10  ;;  %v1347_v36 = vpop.permute.xlu0 %1346 }
 0x281   : > { %v1398_v40 = vsel %vm1382_vm10, %v1381_v39, %v1349_v30  ;;  %v1397_v44 = vsel %vm1382_vm10, %v1380_v35, %v1347_v36  ;;  %v2696_v30 = vld [vmem:[%s2856_s20 + $0x58] sm:$0xff] }
 0x282   : > { %2511 = vmatprep.mubr.msk.f32.mxu1 %vm1401_vm11, %v1397_v44  ;;  %v1167_v36 = vadd.f32 %v2696_v30, %v3429_v63 }
 0x283   : > { %2512 = vmatmul.mubr.msk.f32.gmra.mrb[42].mxu1 %vm1401_vm11, %v1398_v40  ;;  %2528 = vmatmul.mubr.msk.f32.gmra.mrb[6].mxu0 %vm1401_vm11, %v3332_v8 }
 0x284   : > { %2530 = vmatprep.mubr.msk.f32.mxu0 %vm1401_vm11, %v1393_v37  ;;  %v1622_v27 = vpop.permute.xlu0 %1621  ;;  %v1624_v32 = vpop.permute.xlu1 %1623 }
 0x285   : > { %v1638_v43 = vsel %vm529_vm1, %v3167_v31, %v1622_v27  ;;  %v1639_v60 = vsel %vm529_vm1, %v3164_v57, %v1624_v32  ;;  %v2698_v32 = vld [vmem:[%s2856_s20 + $0x68] sm:$0xff] }
 0x287   : > { %2531 = vmatmul.mubr.msk.f32.gmra.mrb[8].mxu0 %vm1401_vm11, %v1394_v33 }
 0x288   : > { %2533 = vmatprep.mubr.msk.f32.mxu0 %vm1401_vm11, %v1395_v29  ;;  %v1633_v45 = vpop.permute.xlu0 %1632  ;;  %v1635_v46 = vpop.permute.xlu1 %1634 }
 0x289   : > { %v1640_v49 = vsel %vm1382_vm10, %v1638_v43, %v1633_v45  ;;  %v1641_v47 = vsel %vm1382_vm10, %v1639_v60, %v1635_v46  ;;  %v1169_v45 = vadd.f32 %v2698_v32, %v3429_v63  ;;  %v2699_v43 = vld [vmem:[%s2856_s20 + $0x60] sm:$0xff] }
 0x28a   : > { %v1168_v46 = vadd.f32 %v2699_v43, %v3429_v63 }
 0x28b   : > { %2534 = vmatmul.mubr.msk.f32.gmra.mrb[10].mxu0 %vm1401_vm11, %v1396_v16 }
 0x28c   : > { %2536 = vmatprep.mubr.msk.f32.mxu0 %vm1401_vm11, %v1397_v44  ;;  %v1823_v57 = vpop.permute.xlu0 %1822  ;;  %v1825_v31 = vpop.permute.xlu1 %1824 }
 0x28d   : > { %v1839_v9 = vsel %vm529_vm1, %v3191_v22, %v1823_v57  ;;  %v1840_v4 = vsel %vm529_vm1, %v3188_v21, %v1825_v31  ;;  %v2686_v21 = vld [vmem:[%s2856_s20 + $0x8] sm:$0xff] }
 0x28f   : > { %2537 = vmatmul.mubr.msk.f32.gmra.mrb[12].mxu0 %vm1401_vm11, %v1398_v40 }
 0x290   : > { %2539 = vmatprep.mubr.msk.f32.mxu0 %vm1401_vm11, %v1640_v49  ;;  %v1834_v61 = vpop.permute.xlu0 %1833  ;;  %v1836_v50 = vpop.permute.xlu1 %1835 }
 0x291   : > { %v1841_v26 = vsel %vm1382_vm10, %v1839_v9, %v1834_v61  ;;  %v1842_v53 = vsel %vm1382_vm10, %v1840_v4, %v1836_v50  ;;  %v2700_v61 = vld [vmem:[%s2856_s20 + $0x78] sm:$0xff] }
 0x292   : > { %v1171_v9 = vadd.f32 %v2700_v61, %v3429_v63 }
 0x293   : > { %2540 = vmatmul.mubr.msk.f32.gmra.mrb[14].mxu0 %vm1401_vm11, %v1641_v47 }
 0x294   : > { %2546 = vmatprep.mubr.msk.f32.mxu0 %vm1401_vm11, %v3307_v41  ;;  %v2687_v41 = vld [vmem:[%s2856_s20] sm:$0xff] }
 0x295   : > { %v1156_v42 = vadd.f32 %v2687_v41, %v3429_v63 }
 0x297   : > { %2547 = vmatmul.mubr.msk.f32.vlgmr.msra.gmra.mrb[0].mxu0 %vm1401_vm11, %v3304_v56  ;;  %v1157_v56 = vadd.f32 %v2686_v21, %v3429_v63 }
 0x298   : > { %2549 = vmatprep.mubr.msk.f32.mxu0 %vm1401_vm11, %v3321_v62  ;;  %v2689_v62 = vld [vmem:[%s2856_s20 + $0x10] sm:$0xff] }
 0x299   : > { %v1158_v2 = vadd.f32 %v2689_v62, %v3429_v63 }
 0x29b   : > { %2550 = vmatmul.mubr.msk.f32.gmra.mrb[2].mxu0 %vm1401_vm11, %v3318_v59 }
 0x29c   : > { %2552 = vmatprep.mubr.msk.f32.mxu0 %vm1401_vm11, %v1391_v10  ;;  %v2691_v10 = vld [vmem:[%s2856_s20 + $0x20] sm:$0xff] }
 0x29d   : > { %v1160_v14 = vadd.f32 %v2691_v10, %v3429_v63 }
 0x29f   : > { %2553 = vmatmul.mubr.msk.f32.gmra.mrb[4].mxu0 %vm1401_vm11, %v3332_v8 }
 0x2a0   : > { %2555 = vmatprep.mubr.msk.f32.mxu0 %vm1401_vm11, %v1393_v37  ;;  %v2693_v37 = vld [vmem:[%s2856_s20 + $0x30] sm:$0xff] }
 0x2a1   : > { %v1162_v38 = vadd.f32 %v2693_v37, %v3429_v63 }
 0x2a3   : > { %2556 = vmatmul.mubr.msk.f32.gmra.mrb[6].mxu0 %vm1401_vm11, %v1394_v33 }
 0x2a4   : > { %2558 = vmatprep.mubr.msk.f32.mxu0 %vm1401_vm11, %v1395_v29  ;;  %v2695_v29 = vld [vmem:[%s2856_s20 + $0x40] sm:$0xff] }
 0x2a5   : > { %v1164_v12 = vadd.f32 %v2695_v29, %v3429_v63 }
 0x2a7   : > { %2559 = vmatmul.mubr.msk.f32.gmra.mrb[8].mxu0 %vm1401_vm11, %v1396_v16 }
 0x2a8   : > { %2561 = vmatprep.mubr.msk.f32.mxu0 %vm1401_vm11, %v1397_v44  ;;  %v2697_v44 = vld [vmem:[%s2856_s20 + $0x50] sm:$0xff] }
 0x2a9   : > { %v1166_v27 = vadd.f32 %v2697_v44, %v3429_v63 }
 0x2ab   : > { %2562 = vmatmul.mubr.msk.f32.gmra.mrb[10].mxu0 %vm1401_vm11, %v1398_v40 }
 0x2ac   : > { %2564 = vmatprep.mubr.msk.f32.mxu0 %vm1401_vm11, %v1640_v49 }
 0x2af   : > { %2565 = vmatmul.mubr.msk.f32.gmra.mrb[12].mxu0 %vm1401_vm11, %v1641_v47 }
 0x2b0   : > { %2567 = vmatprep.mubr.msk.f32.mxu0 %vm1401_vm11, %v1841_v26  ;;  %v2701_v26 = vld [vmem:[%s2856_s20 + $0x70] sm:$0xff] }
 0x2b1   : > { %v1170_v4 = vadd.f32 %v2701_v26, %v3429_v63 }
 0x2b3   : > { %2568 = vmatmul.mubr.msk.f32.gmra.mrb[14].mxu0 %vm1401_vm11, %v1842_v53 }
 0x34e   : > { %v3418_v23 = vpop.f32.mrb[40].mxu1 }
 0x34f   : > { %v3420_v22 = vpop.f32.mrb[41].mxu1  ;;  %v1611_v31 = vadd.f32 %v3418_v23, %v1169_v45 }
 0x350   : > { %v1610_v50 = vadd.f32 %v3420_v22, %v1168_v46 }
 0x356   : > { %v3422_v51 = vpop.f32.mrb[42].mxu1 }
 0x357   : > { %v3424_v55 = vpop.f32.mrb[43].mxu1  ;;  %v1613_v23 = vadd.f32 %v3422_v51, %v1171_v9 }
 0x36a   : > { %v2548_v1 = vpop.f32.mrb[0].mxu0 }
 0x36b   : > { %v2594_v5 = vadd.f32 %v2548_v1, %v1157_v56  ;;  %v1921_v28 = vpop.f32.mrb[1].mxu0 }
 0x36c   : > { %v2595_v59 = vadd.f32 %v1921_v28, %v1156_v42  ;;  %v1612_v42 = vadd.f32 %v3424_v55, %v1170_v4 }
 0x36d   : > { %2017 = vst.msk [vmem:[%s3440_s23 + $0x8] sm:$0xff] %vm529_vm1, %v2594_v5 }
 0x36e   : > { %2016 = vst.msk [vmem:[%s3440_s23] sm:$0xff] %vm529_vm1, %v2595_v59  ;;  %v2551_v13 = vpop.f32.mrb[2].mxu0 }
 0x36f   : > { %v2596_v17 = vadd.f32 %v2551_v13, %v1159_v58  ;;  %v1931_v52 = vpop.f32.mrb[3].mxu0 }
 0x370   : > { %v2597_v8 = vadd.f32 %v1931_v52, %v1158_v2 }
 0x371   : > { %2019 = vst.msk [vmem:[%s3440_s23 + $0x18] sm:$0xff] %vm529_vm1, %v2596_v17 }
 0x372   : > { %2018 = vst.msk [vmem:[%s3440_s23 + $0x10] sm:$0xff] %vm529_vm1, %v2597_v8  ;;  %v2554_v18 = vpop.f32.mrb[4].mxu0 }
 0x373   : > { %v2598_v34 = vadd.f32 %v2554_v18, %v1161_v7  ;;  %v1941_v19 = vpop.f32.mrb[5].mxu0 }
 0x374   : > { %v2599_v33 = vadd.f32 %v1941_v19, %v1160_v14 }
 0x375   : > { %2021 = vst.msk [vmem:[%s3440_s23 + $0x28] sm:$0xff] %vm529_vm1, %v2598_v34 }
 0x376   : > { %2020 = vst.msk [vmem:[%s3440_s23 + $0x20] sm:$0xff] %vm529_vm1, %v2599_v33  ;;  %v2557_v0 = vpop.f32.mrb[6].mxu0 }
 0x377   : > { %v2600_v48 = vadd.f32 %v2557_v0, %v1163_v25  ;;  %v1951_v54 = vpop.f32.mrb[7].mxu0 }
 0x378   : > { %v2601_v16 = vadd.f32 %v1951_v54, %v1162_v38 }
 0x379   : > { %2023 = vst.msk [vmem:[%s3440_s23 + $0x38] sm:$0xff] %vm529_vm1, %v2600_v48 }
 0x37a   : > { %2022 = vst.msk [vmem:[%s3440_s23 + $0x30] sm:$0xff] %vm529_vm1, %v2601_v16  ;;  %v2560_v24 = vpop.f32.mrb[8].mxu0 }
 0x37b   : > { %v2602_v39 = vadd.f32 %v2560_v24, %v1165_v15  ;;  %v1961_v35 = vpop.f32.mrb[9].mxu0 }
 0x37c   : > { %v2603_v40 = vadd.f32 %v1961_v35, %v1164_v12 }
 0x37d   : > { %2025 = vst.msk [vmem:[%s3440_s23 + $0x48] sm:$0xff] %vm529_vm1, %v2602_v39 }
 0x37e   : > { %2024 = vst.msk [vmem:[%s3440_s23 + $0x40] sm:$0xff] %vm529_vm1, %v2603_v40  ;;  %v2563_v49 = vpop.f32.mrb[10].mxu0 }
 0x37f   : > { %v2604_v60 = vadd.f32 %v2563_v49, %v1167_v36  ;;  %v1971_v47 = vpop.f32.mrb[11].mxu0 }
 0x380   : > { %v2605_v57 = vadd.f32 %v1971_v47, %v1166_v27 }
 0x381   : > { %2027 = vst.msk [vmem:[%s3440_s23 + $0x58] sm:$0xff] %vm529_vm1, %v2604_v60 }
 0x382   : > { %2026 = vst.msk [vmem:[%s3440_s23 + $0x50] sm:$0xff] %vm529_vm1, %v2605_v57  ;;  %v2566_v53 = vpop.f32.mrb[12].mxu0 }
 0x383   : > { %v2607_v21 = vadd.f32 %v2566_v53, %v1611_v31  ;;  %v1981_v56 = vpop.f32.mrb[13].mxu0 }
 0x384   : > { %v2609_v41 = vadd.f32 %v1981_v56, %v1610_v50 }
 0x385   : > { %2029 = vst.msk [vmem:[%s3440_s23 + $0x68] sm:$0xff] %vm529_vm1, %v2607_v21 }
 0x386   : > { %2028 = vst.msk [vmem:[%s3440_s23 + $0x60] sm:$0xff] %vm529_vm1, %v2609_v41  ;;  %v2569_v22 = vpop.f32.mrb[14].mxu0 }
 0x387   : > { %v2611_v1 = vadd.f32 %v2569_v22, %v1613_v23  ;;  %v1991_v5 = vpop.f32.mrb[15].mxu0 }
 0x388   : > { %v2613_v28 = vadd.f32 %v1991_v5, %v1612_v42 }
 0x389   : > { %2031 = vst.msk [vmem:[%s3440_s23 + $0x78] sm:$0xff] %vm529_vm1, %v2611_v1 }
 0x38a   : > { %2030 = vst.msk [vmem:[%s3440_s23 + $0x70] sm:$0xff] %vm529_vm1, %v2613_v28 }
 0x38b PF: > { %s19_s13 = sadd.s32 1, %s2740_s13   ;;  %s3534_s30 = smov %s2732_s11 }
 0x38c   : > { %p16_p12 = scmp.ge.s32.totalorder %s19_s13, 6   ;;  %s3535_s10 = smov %s2736_s12 }
 0x38d   : > { %s3536_s11 = smov %s3539_s14  ;;  %s3537_s12 = smov %s3543_s15 }
 0x38e   :  { %18 = sbr.rel (!%p16_p12) target bundleno = 3 (0x3), region = 94 }

</bundles_post_ra>
